<compile_context>
chip_gen: v7x
topology: tpu7x:2x2x1
jax: 0.10.0
libtpu: 0.0.40
codegen_flags: <defaults>
</compile_context>

<pallas_src>
import functools

import jax
import jax.numpy as jnp
from jax import lax
from jax.experimental import pallas as pl
from jax.experimental.pallas import tpu as pltpu

_LANE = 128
_ACC_BANDS = 3                    # [intersection, prob_sum, target_sum]
_ACC_WIDTH = _ACC_BANDS * _LANE


def _sigmoid_f32(x):
    # sigmoid(x) == 0.5 * tanh(x/2) + 0.5: one EUP op + a VPU mul/add instead of
    # the f32 divide sequence jax.nn.sigmoid expands to on the VALU slot.
    return 0.5 * jnp.tanh(0.5 * x) + 0.5


def _dice_chunk_kernel(logits_ref, targets_ref, acc_ref, *,
                       full_chunks, full_steps, tail_full_chunks, tail_rem,
                       unroll):
    """Lane-dense partial sums for the dice terms.

    grid = (row_tiles [parallel], lane_steps [arbitrary, innermost]).
    acc_ref block (row_tile, 384) is constant along the lane axis (VMEM-resident
    accumulator): lanes [0,128) intersection, [128,256) prob sum, [256,384)
    target sum; each spread over 128 lanes per row (reduced in the epilogue).
    The last lane step may be ragged; it is masked with a static iota mask.
    """
    k = pl.program_id(1)

    @pl.when(k == 0)
    def _():
        acc_ref[...] = jnp.zeros_like(acc_ref)

    rt = acc_ref.shape[0]
    zeros = jnp.zeros((rt, _LANE), jnp.float32)

    def accum_chunk(ci, accs, mask=None):
        acc_i, acc_p, acc_t = accs
        start = ci * _LANE
        if not isinstance(start, int):
            start = pl.multiple_of(start, _LANE)
        x = logits_ref[:, pl.ds(start, _LANE)].astype(jnp.float32)
        t = targets_ref[:, pl.ds(start, _LANE)].astype(jnp.float32)
        p = _sigmoid_f32(x)
        if mask is not None:        # static: only the ragged tail chunk
            p = jnp.where(mask, p, 0.0)
            t = jnp.where(mask, t, 0.0)
        return (acc_i + p * t, acc_p + p, acc_t + t)

    def flush(accs):
        acc_i, acc_p, acc_t = accs
        acc_ref[:, 0 * _LANE:1 * _LANE] += acc_i
        acc_ref[:, 1 * _LANE:2 * _LANE] += acc_p
        acc_ref[:, 2 * _LANE:3 * _LANE] += acc_t

    def run_full():
        accs = lax.fori_loop(0, full_chunks, accum_chunk,
                             (zeros, zeros, zeros), unroll=unroll)
        flush(accs)

    has_tail = (tail_full_chunks > 0) or (tail_rem > 0)
    if not has_tail:
        run_full()
    else:
        @pl.when(k < full_steps)
        def _():
            run_full()

        @pl.when(k == full_steps)
        def _():
            accs = (zeros, zeros, zeros)
            if tail_full_chunks > 0:
                accs = lax.fori_loop(0, tail_full_chunks, accum_chunk, accs,
                                     unroll=min(unroll, tail_full_chunks))
            if tail_rem > 0:
                lane = lax.broadcasted_iota(jnp.int32, (rt, _LANE), 1)
                accs = accum_chunk(tail_full_chunks, accs, mask=lane < tail_rem)
            flush(accs)


def _dice_small_kernel(logits_ref, targets_ref, acc_ref):
    """Fallback for very short rows (< 128 lanes): whole-block compute with an
    in-kernel cross-lane reduce.  grid = (row_tiles,)."""
    x = logits_ref[...].astype(jnp.float32)
    t = targets_ref[...].astype(jnp.float32)
    p = _sigmoid_f32(x)
    acc_ref[...] = jnp.zeros_like(acc_ref)
    acc_ref[:, 0:1] = jnp.sum(p * t, axis=-1, keepdims=True)
    acc_ref[:, _LANE:_LANE + 1] = jnp.sum(p, axis=-1, keepdims=True)
    acc_ref[:, 2 * _LANE:2 * _LANE + 1] = jnp.sum(t, axis=-1, keepdims=True)


def _divisors(n):
    small, large = [], []
    d = 1
    while d * d <= n:
        if n % d == 0:
            small.append(d)
            if d != n // d:
                large.append(n // d)
        d += 1
    return small + large[::-1]


def _choose_fold(nc, length, sub):
    """Rows-per-sample R with R | length (free, sample-pure contiguous reshape).
    Prefer nc*R a multiple of `sub` (full sublanes) and >= 2*sub (>=2 row tiles
    so the parallel axis has extent >= 2 for the v7x megacore), keep rows with
    at least 128 lanes."""
    if nc % (2 * sub) == 0:
        return 1
    cands = [r for r in _divisors(length)
             if (nc * r) % sub == 0 and length // r >= _LANE]
    if not cands:
        return 1
    pref2 = [r for r in cands if nc * r >= 2 * sub]
    if pref2:
        return min(pref2)
    pref1 = [r for r in cands if nc * r >= sub]
    if pref1:
        return min(pref1)
    return max(cands)


def _choose_row_tile(rows, sub):
    if rows % sub != 0:
        return rows                    # full-dim sublane block (always legal)
    groups = rows // sub
    if groups < 2:
        return rows
    # keep >= 2 row tiles (megacore) and <= 32 rows per tile (acc vregs stay small)
    g = max(1, min(groups // 2, max(1, 32 // sub)))
    while groups % g:
        g -= 1
    return sub * g


def dice_loss(logits, targets, smooth=1.0):
    """Pallas implementation of DiceLoss.forward.

    logits:  [N, C, H, W]; targets: [N, C, H, W] (float or integer mask).
    Returns scalar float32 loss = 1 - mean_over_(N,C)(dice).
    """
    assert logits.shape == targets.shape, (
        f"Shape mismatch in DiceLoss: {logits.shape} vs {targets.shape}")
    n, c, h, w = logits.shape
    nc, L = n * c, h * w

    # Targets stay in their native (possibly 1-byte) dtype; the on-chip per-chunk
    # astype(f32) does the conversion, so there is no wrapper-side HBM prepass.
    if targets.dtype == jnp.bool_:
        targets = targets.astype(jnp.uint8)   # 1B -> 1B (Pallas has no i1 refs)

    logit_isz = jnp.dtype(logits.dtype).itemsize
    tgt_isz = jnp.dtype(targets.dtype).itemsize
    sub = max(8, 32 // min(logit_isz, tgt_isz))   # 8 f32 / 16 bf16 / 32 int8

    R = _choose_fold(nc, L, sub)
    rows, row_len = nc * R, L // R
    row_tile = _choose_row_tile(rows, sub)
    row_tiles = rows // row_tile

    # Free (contiguous, sample-pure) reshape — no padding, no copy.
    logits2d = logits.reshape(rows, row_len)
    targets2d = targets.reshape(rows, row_len)

    acc_shape = jax.ShapeDtypeStruct((rows, _ACC_WIDTH), jnp.float32)

    if row_len < _LANE:
        # Tiny-row fallback (only reachable for images smaller than ~128 px).
        acc = pl.pallas_call(
            _dice_small_kernel,
            out_shape=acc_shape,
            grid_spec=pltpu.PrefetchScalarGridSpec(
                num_scalar_prefetch=0,
                grid=(row_tiles,),
                in_specs=[pl.BlockSpec((row_tile, row_len), lambda i: (i, 0)),
                          pl.BlockSpec((row_tile, row_len), lambda i: (i, 0))],
                out_specs=pl.BlockSpec((row_tile, _ACC_WIDTH), lambda i: (i, 0)),
            ),
            compiler_params=pltpu.CompilerParams(
                dimension_semantics=("parallel",)),
        )(logits2d, targets2d)
    else:
        # Per-generation VMEM budget (v7x: 64 MiB physical, v5e/v6e: 128 MiB).
        try:
            vmem_cap = int(pltpu.get_tpu_info().vmem_capacity_bytes)
        except Exception:
            vmem_cap = 64 * 1024 * 1024
        vmem_limit = min(vmem_cap // 2, 64 * 1024 * 1024)
        input_budget = vmem_limit // 2              # both inputs, double-buffered

        max_tile_l = input_budget // (2 * row_tile * (logit_isz + tgt_isz))
        target_tile_l = (2 * 1024 * 1024) // (row_tile * logit_isz)  # ~2MiB/block
        tile_l = min(max_tile_l, target_tile_l, row_len)
        tile_l = max(_LANE, (tile_l // _LANE) * _LANE)

        full_steps = row_len // tile_l
        tail_valid = row_len - full_steps * tile_l
        lane_steps = full_steps + (1 if tail_valid else 0)
        full_chunks = tile_l // _LANE

        kernel = functools.partial(
            _dice_chunk_kernel,
            full_chunks=full_chunks,
            full_steps=full_steps,
            tail_full_chunks=tail_valid // _LANE,
            tail_rem=tail_valid % _LANE,
            unroll=min(8, full_chunks),
        )
        in_spec = pl.BlockSpec((row_tile, tile_l), lambda i, k: (i, k))
        # TODO(synk): when row_tiles == 1 (odd nc with no exact fold) the v7x
        # second TensorCore idles; splitting the lane reduction into 2 parallel
        # segments with separate accumulator blocks would recover it.
        acc = pl.pallas_call(
            kernel,
            out_shape=acc_shape,
            grid_spec=pltpu.PrefetchScalarGridSpec(
                num_scalar_prefetch=0,
                grid=(row_tiles, lane_steps),
                in_specs=[in_spec, in_spec],
                out_specs=pl.BlockSpec((row_tile, _ACC_WIDTH),
                                       lambda i, k: (i, 0)),
            ),
            compiler_params=pltpu.CompilerParams(
                dimension_semantics=("parallel", "arbitrary"),
                vmem_limit_bytes=vmem_limit,
            ),
        )(logits2d, targets2d)

    # Tiny JAX epilogue: fold the R rows of each sample and the 128 lanes of
    # each band back together, then dice + mean (a few KiB of data).
    sums = acc.reshape(nc, R, _ACC_BANDS, _LANE).sum(axis=(1, 3))   # (nc, 3)
    inter, psum, tsum = sums[:, 0], sums[:, 1], sums[:, 2]
    dice = (2.0 * inter + smooth) / (psum + tsum + smooth)
    return (1.0 - jnp.mean(dice)).astype(jnp.float32)


def dice_loss_ref(logits, targets, smooth=1.0):
    """Pure-JAX reference mirroring the PyTorch forward exactly."""
    probs = jax.nn.sigmoid(logits.astype(jnp.float32))
    flat_p = probs.reshape(probs.shape[0], probs.shape[1], -1)
    flat_t = targets.astype(jnp.float32).reshape(
        targets.shape[0], targets.shape[1], -1)
    intersection = jnp.sum(flat_p * flat_t, axis=-1)
    union = jnp.sum(flat_p, axis=-1) + jnp.sum(flat_t, axis=-1)
    dice = (2.0 * intersection + smooth) / (union + smooth)
    return 1.0 - jnp.mean(dice)


if __name__ == "__main__":
    key = jax.random.PRNGKey(0)
    k1, k2, k3, k4, k5, k6 = jax.random.split(key, 6)

    # 1) Module's typical small call [2,1,16,16], float mask targets.
    logits1 = jax.random.normal(k1, (2, 1, 16, 16), dtype=jnp.float32)
    targets1 = (jax.random.uniform(k2, (2, 1, 16, 16)) > 0.5).astype(jnp.float32)

    # 2) [2,1,80,56] with integer mask targets fed directly (no wrapper cast);
    #    exercises row folding, the fori_loop chunk walk and the ragged tail mask.
    logits2 = jax.random.normal(k3, (2, 1, 80, 56), dtype=jnp.float32)
    targets2 = (jax.random.uniform(k4, (2, 1, 80, 56)) > 0.5).astype(jnp.int32)

    # 3) [3,1,8,8]: rows shorter than one lane chunk -> small-path kernel.
    logits3 = jax.random.normal(k5, (3, 1, 8, 8), dtype=jnp.float32)
    targets3 = (jax.random.uniform(k6, (3, 1, 8, 8)) > 0.5).astype(jnp.float32)

    for lg, tg in ((logits1, targets1), (logits2, targets2), (logits3, targets3)):
        out = jax.block_until_ready(dice_loss(lg, tg, smooth=1.0))
        ref = jax.block_until_ready(dice_loss_ref(lg, tg, smooth=1.0))
        assert jnp.allclose(out, ref, atol=1e-5, rtol=1e-5), (lg.shape, out, ref)

    print("KERNEL_OK")
</pallas_src>

<mosaic_0001>
module attributes {stable_mosaic.version = 11 : i64} {
  func.func @_dice_chunk_kernel(%arg0: i32, %arg1: i32, %arg2: memref<2x256xf32, #tpu.memory_space<vmem>>, %arg3: memref<2x256xf32, #tpu.memory_space<vmem>>, %arg4: memref<2x384xf32, #tpu.memory_space<vmem>>) attributes {dimension_semantics = [#tpu.dimension_semantics<parallel>, #tpu.dimension_semantics<arbitrary>], iteration_bounds = array<i64: 1, 1>, scalar_prefetch = 0 : i64, scratch_operands = 0 : i64, tpu.core_type = #tpu.core_type<tc>, window_params = [{transform_indices = @transform_0, window_bounds = array<i64: 2, 256>}, {transform_indices = @transform_1, window_bounds = array<i64: 2, 256>}, {transform_indices = @transform_2, window_bounds = array<i64: 2, 384>}]} {
    %c0_i32 = arith.constant 0 : i32
    %0 = arith.cmpi eq, %arg1, %c0_i32 : i32
    %1 = arith.extui %0 : i1 to i32
    %c0_i32_0 = arith.constant 0 : i32
    %2 = arith.cmpi ne, %1, %c0_i32_0 : i32
    scf.if %2 {
      %cst_22 = arith.constant 0.000000e+00 : f32
      %47 = vector.broadcast %cst_22 : f32 to vector<2x384xf32>
      %c0_23 = arith.constant 0 : index
      %c0_24 = arith.constant 0 : index
      %48 = vector.load %arg4[%c0_23, %c0_24] : memref<2x384xf32, #tpu.memory_space<vmem>>, vector<2x384xf32>
      tpu.vector_store %arg4[%c0_23, %c0_24], %47 {strides = array<i32>} : memref<2x384xf32, #tpu.memory_space<vmem>>, vector<2x384xf32>,
    } else {
    }
    %cst = arith.constant 0.000000e+00 : f32
    %3 = vector.broadcast %cst : f32 to vector<2x128xf32>
    %c0_i32_1 = arith.constant 0 : i32
    %c128_i32 = arith.constant 128 : i32
    %4 = arith.muli %c0_i32_1, %c128_i32 : i32
    %5 = tpu.assume_multiple %4, 128 : i32
    %c0 = arith.constant 0 : index
    %6 = arith.index_cast %5 : i32 to index
    %7 = vector.load %arg2[%c0, %6] : memref<2x256xf32, #tpu.memory_space<vmem>>, vector<2x128xf32>
    %c0_2 = arith.constant 0 : index
    %8 = arith.index_cast %5 : i32 to index
    %9 = vector.load %arg3[%c0_2, %8] : memref<2x256xf32, #tpu.memory_space<vmem>>, vector<2x128xf32>
    %cst_3 = arith.constant 5.000000e-01 : f32
    %10 = vector.broadcast %cst_3 : f32 to vector<2x128xf32>
    %11 = arith.mulf %10, %7 : vector<2x128xf32>
    %12 = math.tanh %11 : vector<2x128xf32>
    %cst_4 = arith.constant 5.000000e-01 : f32
    %13 = vector.broadcast %cst_4 : f32 to vector<2x128xf32>
    %14 = arith.mulf %13, %12 : vector<2x128xf32>
    %cst_5 = arith.constant 5.000000e-01 : f32
    %15 = vector.broadcast %cst_5 : f32 to vector<2x128xf32>
    %16 = arith.addf %14, %15 : vector<2x128xf32>
    %17 = arith.mulf %16, %9 : vector<2x128xf32>
    %18 = arith.addf %3, %17 : vector<2x128xf32>
    %19 = arith.addf %3, %16 : vector<2x128xf32>
    %20 = arith.addf %3, %9 : vector<2x128xf32>
    %c1_i32 = arith.constant 1 : i32
    %c128_i32_6 = arith.constant 128 : i32
    %21 = arith.muli %c1_i32, %c128_i32_6 : i32
    %22 = tpu.assume_multiple %21, 128 : i32
    %c0_7 = arith.constant 0 : index
    %23 = arith.index_cast %22 : i32 to index
    %24 = vector.load %arg2[%c0_7, %23] : memref<2x256xf32, #tpu.memory_space<vmem>>, vector<2x128xf32>
    %c0_8 = arith.constant 0 : index
    %25 = arith.index_cast %22 : i32 to index
    %26 = vector.load %arg3[%c0_8, %25] : memref<2x256xf32, #tpu.memory_space<vmem>>, vector<2x128xf32>
    %cst_9 = arith.constant 5.000000e-01 : f32
    %27 = vector.broadcast %cst_9 : f32 to vector<2x128xf32>
    %28 = arith.mulf %27, %24 : vector<2x128xf32>
    %29 = math.tanh %28 : vector<2x128xf32>
    %cst_10 = arith.constant 5.000000e-01 : f32
    %30 = vector.broadcast %cst_10 : f32 to vector<2x128xf32>
    %31 = arith.mulf %30, %29 : vector<2x128xf32>
    %cst_11 = arith.constant 5.000000e-01 : f32
    %32 = vector.broadcast %cst_11 : f32 to vector<2x128xf32>
    %33 = arith.addf %31, %32 : vector<2x128xf32>
    %34 = arith.mulf %33, %26 : vector<2x128xf32>
    %35 = arith.addf %18, %34 : vector<2x128xf32>
    %36 = arith.addf %19, %33 : vector<2x128xf32>
    %37 = arith.addf %20, %26 : vector<2x128xf32>
    %c2_i32 = arith.constant 2 : i32
    %c0_12 = arith.constant 0 : index
    %c0_13 = arith.constant 0 : index
    %38 = vector.load %arg4[%c0_12, %c0_13] : memref<2x384xf32, #tpu.memory_space<vmem>>, vector<2x128xf32>
    %39 = arith.addf %38, %35 : vector<2x128xf32>
    %c0_14 = arith.constant 0 : index
    %c0_15 = arith.constant 0 : index
    %40 = vector.load %arg4[%c0_14, %c0_15] : memref<2x384xf32, #tpu.memory_space<vmem>>, vector<2x128xf32>
    tpu.vector_store %arg4[%c0_14, %c0_15], %39 {strides = array<i32>} : memref<2x384xf32, #tpu.memory_space<vmem>>, vector<2x128xf32>,
    %c0_16 = arith.constant 0 : index
    %c128 = arith.constant 128 : index
    %41 = vector.load %arg4[%c0_16, %c128] : memref<2x384xf32, #tpu.memory_space<vmem>>, vector<2x128xf32>
    %42 = arith.addf %41, %36 : vector<2x128xf32>
    %c0_17 = arith.constant 0 : index
    %c128_18 = arith.constant 128 : index
    %43 = vector.load %arg4[%c0_17, %c128_18] : memref<2x384xf32, #tpu.memory_space<vmem>>, vector<2x128xf32>
    tpu.vector_store %arg4[%c0_17, %c128_18], %42 {strides = array<i32>} : memref<2x384xf32, #tpu.memory_space<vmem>>, vector<2x128xf32>,
    %c0_19 = arith.constant 0 : index
    %c256 = arith.constant 256 : index
    %44 = vector.load %arg4[%c0_19, %c256] : memref<2x384xf32, #tpu.memory_space<vmem>>, vector<2x128xf32>
    %45 = arith.addf %44, %37 : vector<2x128xf32>
    %c0_20 = arith.constant 0 : index
    %c256_21 = arith.constant 256 : index
    %46 = vector.load %arg4[%c0_20, %c256_21] : memref<2x384xf32, #tpu.memory_space<vmem>>, vector<2x128xf32>
    tpu.vector_store %arg4[%c0_20, %c256_21], %45 {strides = array<i32>} : memref<2x384xf32, #tpu.memory_space<vmem>>, vector<2x128xf32>,
    return
  }
  func.func @transform_0(%arg0: i32, %arg1: i32) -> (i32, i32) {
    %c0_i32 = arith.constant 0 : i32
    return %arg0, %arg1 : i32, i32
  }
  func.func @transform_1(%arg0: i32, %arg1: i32) -> (i32, i32) {
    %c0_i32 = arith.constant 0 : i32
    return %arg0, %arg1 : i32, i32
  }
  func.func @transform_2(%arg0: i32, %arg1: i32) -> (i32, i32) {
    %c0_i32 = arith.constant 0 : i32
    %c0_i32_0 = arith.constant 0 : i32
    return %arg0, %c0_i32 : i32, i32
  }
}

</mosaic_0001>

<bundles_post_ra>
// kernel: tpu_custom_call.1
= control target key start
LH: loop header
LB: loop body
LE: loop exit
PB: predicated region body
PF: predicated region fallthrough
CT: control target
= control target key end

     0   :  { %7 = vsyncpa [#allocation3], 0  ;;  %s223_s0 = inlined_call_operand.hbm [shape: f32[2,256], index: 0, kind: input, shape index: {}]   ;;  %s224_s1 = inlined_call_operand.hbm [shape: f32[2,256], index: 1, kind: input, shape index: {}]   ;;  %s225_s2 = inlined_call_operand.hbm [shape: f32[2,384], index: 2, kind: output, shape index: {}]  }
   0x1   :  { %8 = vsyncpa [#allocation6], 0 }
   0x2   :  { %9 = vsyncpa [#allocation4], 0  ;;  %s168_s9 = smov [#allocation2]   ;;  %s169_s11 = smov [#allocation5]  }
   0x3   :  { %s16_s10 = sshll.u32 %s168_s9, 4  ;;  %s26_s12 = sshll.u32 %s169_s11, 4  ;;  %s17_s10 = int_to_ptr.vmem [resolvable:$true] %s16_s10  ;;  %s27_s12 = int_to_ptr.vmem [resolvable:$true] %s26_s12 }
   0x4   :  { %s96_s15 = scalar_lea.hbm %s223_s0, 64 }
   0x5   :  { %p97_p0 = scmp.ne.s32.totalorder %s223_s0, %s96_s15  ;;  %p100_p1 = scmp.lt.u32.totalorder %s96_s15, %s223_s0 }
   0x7   :  { %p102_p2 = pnand %p100_p1, %p97_p0 }
   0x9   :  { %105 = shalt.err (!%p102_p2)
}
   0xa   :  { %s106_s20 = scalar_lea.vmem %s17_s10, 64  ;;  %p111_p4 = scmp.lt.s32.totalorder %s17_s10, %s17_s10 }
   0xb   :  { %p107_p3 = scmp.ne.s32.totalorder %s17_s10, %s106_s20  ;;  %p112_p5 = scmp.lt.s32.totalorder %s106_s20, %s106_s20 }
   0xd   :  { %p113_p6 = por %p112_p5, %p111_p4 }
   0xf   :  { %p114_p7 = pnand %p113_p6, %p107_p3 }
  0x11   :  { %117 = shalt.err (!%p114_p7)
}
  0x12   :  { %19 = dma.hbm_to_vmem [thread:$0]  %s223_s0, 64, %s17_s10, [#allocation3]  }
  0x13   :  { %s118_s25 = scalar_lea.hbm %s224_s1, 64 }
  0x14   :  { %p119_p8 = scmp.ne.s32.totalorder %s224_s1, %s118_s25  ;;  %p122_p9 = scmp.lt.u32.totalorder %s118_s25, %s224_s1 }
  0x16   :  { %p124_p10 = pnand %p122_p9, %p119_p8 }
  0x18   :  { %127 = shalt.err (!%p124_p10)
}
  0x19   :  { %s128_s30 = scalar_lea.vmem %s27_s12, 64  ;;  %p133_p12 = scmp.lt.s32.totalorder %s27_s12, %s27_s12 }
  0x1a   :  { %p129_p11 = scmp.ne.s32.totalorder %s27_s12, %s128_s30  ;;  %p134_p13 = scmp.lt.s32.totalorder %s128_s30, %s128_s30 }
  0x1c   :  { %p135_p0 = por %p134_p13, %p133_p12 }
  0x1e   :  { %p136_p1 = pnand %p135_p0, %p129_p11 }
  0x20   :  { %139 = shalt.err (!%p136_p1)
}
  0x21   :  { %29 = dma.hbm_to_vmem [thread:$0]  %s224_s1, 64, %s27_s12, [#allocation6]  }
  0x22   :  { %162 = dma.done.wait [#allocation3], 64  }
  0x23   :  { %163 = vsyncadd [#allocation3], 4294967232 }
  0x24   :  { %164 = dma.done.wait [#allocation6], 64  }
  0x25   :  { %165 = vsyncadd [#allocation6], 4294967232  ;;  %v170_v0 = vmov 0.0   ;;  %v41_v1 = vld [vmem:[#allocation2] sm:$0x3]  ;;  %s171_s1 = smov [#allocation7]  }
  0x26   :  { %40 = vst [vmem:[#allocation7] sm:$0x3f] %v170_v0  ;;  %v52_v2 = vld [vmem:[#allocation2 + $0x2] sm:$0x3]  ;;  %v42_v3 = vld [vmem:[#allocation5] sm:$0x3] }
  0x27   :  { %v43_v4 = vmul.f32 0.5, %v41_v1  ;;  %v54_v5 = vld [vmem:[#allocation5 + $0x2] sm:$0x3]  ;;  %v55_v6 = vmul.f32 0.5, %v52_v2  ;;  %s78_s4 = sshll.u32 %s171_s1, 4  ;;  %s79_s4 = int_to_ptr.vmem [resolvable:$true] %s78_s4 }
  0x28   :  { %v62_v7 = vadd.f32 %v54_v5, %v42_v3  ;;  %s140_s5 = scalar_lea.vmem %s79_s4, 96  ;;  %p145_p3 = scmp.lt.s32.totalorder %s79_s4, %s79_s4 }
  0x29   :  { %92 = vtanh.f32 %v43_v4  ;;  %p141_p2 = scmp.ne.s32.totalorder %s79_s4, %s140_s5  ;;  %p146_p4 = scmp.lt.s32.totalorder %s140_s5, %s140_s5 }
  0x2a   :  { %94 = vtanh.f32 %v55_v6 }
  0x2b   :  { %p147_p5 = por %p146_p4, %p145_p3 }
  0x2d   :  { %v69_v8 = vld [vmem:[#allocation7 + $0x4] sm:$0x3]  ;;  %v66_v17 = vld [vmem:[#allocation7 + $0x2] sm:$0x3]  ;;  %v63_v20 = vld [vmem:[#allocation7] sm:$0x3]  ;;  %p148_p6 = pnand %p147_p5, %p141_p2 }
  0x2e   :  { %v70_v9 = vadd.f32 %v69_v8, %v62_v7 }
  0x30   :  { %71 = vst [vmem:[#allocation7 + $0x4] sm:$0x3] %v70_v9 }
  0x33   :  { %v93_v10 = vpop.eup %92 }
  0x34   :  { %v95_v11 = vpop.eup %94  ;;  %v45_v12 = vmul.f32 0.5, %v93_v10 }
  0x35   :  { %v57_v13 = vmul.f32 0.5, %v95_v11 }
  0x36   :  { %v46_v14 = vadd.f32 0.5, %v45_v12 }
  0x37   :  { %v58_v15 = vadd.f32 0.5, %v57_v13 }
  0x38   :  { %v47_v16 = vmul.f32 %v46_v14, %v42_v3 }
  0x39   :  { %v59_v18 = vmul.f32 %v58_v15, %v54_v5  ;;  %v61_v19 = vadd.f32 %v58_v15, %v46_v14 }
  0x3b   :  { %v60_v21 = vadd.f32 %v59_v18, %v47_v16  ;;  %v67_v22 = vadd.f32 %v66_v17, %v61_v19 }
  0x3d   :  { %v64_v23 = vadd.f32 %v63_v20, %v60_v21  ;;  %68 = vst [vmem:[#allocation7 + $0x2] sm:$0x3] %v67_v22 }
  0x3f   :  { %65 = vst [vmem:[#allocation7] sm:$0x3] %v64_v23 }
  0x40   :  { %151 = shalt.err (!%p148_p6)
}
  0x41   :  { %s152_s8 = scalar_lea.hbm %s225_s2, 96 }
  0x42   :  { %p153_p7 = scmp.ne.s32.totalorder %s225_s2, %s152_s8  ;;  %p156_p8 = scmp.lt.u32.totalorder %s152_s8, %s225_s2 }
  0x44   :  { %p158_p9 = pnand %p156_p8, %p153_p7 }
  0x46   :  { %161 = shalt.err (!%p158_p9)
}
  0x47   :  { %81 = dma.vmem_to_hbm [thread:$0]  %s79_s4, 96, %s225_s2, [#allocation4]  }
  0x48   :  { %166 = dma.done.wait [#allocation4], 96  }
  0x49   :  { %167 = vsyncadd [#allocation4], 4294967200 }
  0x4a   :  { %85 = vsyncpa [#allocation3], 1 }
  0x4b   :  { %86 = vsyncpa [#allocation6], 1 }
  0x4c   :  { %87 = vsyncpa [#allocation4], 1 }

</bundles_post_ra>
